<compile_context>
chip_gen: v7x
topology: tpu7x:2x2x1
jax: 0.10.0
libtpu: 0.0.40
codegen_flags: <defaults>
</compile_context>

<pallas_src>
import functools

import jax
import jax.numpy as jnp
from jax import lax
from jax.experimental import pallas as pl
from jax.experimental.pallas import tpu as pltpu

EPS = 1e-12
_NSEM = 8   # number of row-gather DMAs kept in flight per grid step


def embeddings_kernel(
        # --- scalar prefetch (SMEM) ---
        x_ids_smem,            # (N,) int32 flattened token ids
        # --- inputs ---
        seg_ids_ref,           # (NB, 1) int32 VMEM
        tok_hbm,               # (V, D)  token table, stays in HBM (pl.ANY)
        pos_ref,               # (L, D)  position table, VMEM
        seg_ref,               # (G, D)  segment table, VMEM
        gamma_ref,             # (1, D)  VMEM
        beta_ref,              # (1, D)  VMEM
        # --- output ---
        out_ref,               # (NB, D) VMEM
        # --- scratch ---
        tok_buf,               # (NB, D) VMEM gather landing buffer (table dtype)
        sems,                  # (_NSEM,) DMA semaphores
        *, seq_len, block_rows):
    nb, d = out_ref.shape
    n_seg = seg_ref.shape[0]
    base = pl.program_id(0) * block_rows

    # ---- token embedding: DMA row gather straight out of HBM -------------
    # Ids live in SMEM (scalar prefetch) so they can drive DMA addressing;
    # the full vocab table never occupies VMEM.
    def start_row(r):
        tid = x_ids_smem[base + r]
        pltpu.make_async_copy(tok_hbm.at[tid], tok_buf.at[r],
                              sems.at[r % _NSEM]).start()

    def wait_row(r):
        pltpu.make_async_copy(tok_hbm.at[0], tok_buf.at[r],
                              sems.at[r % _NSEM]).wait()

    for r in range(min(_NSEM, block_rows)):        # static prologue: fill window
        start_row(r)

    @pl.loop(0, block_rows)
    def _(r):
        wait_row(r)

        @pl.when(r + _NSEM < block_rows)           # keep <= _NSEM DMAs in flight
        def _():
            start_row(r + _NSEM)

    e = tok_buf[...].astype(jnp.float32)           # (NB, D), f32 LN math only

    # ---- position embedding: broadcast add (no gather, no concatenate) ---
    reps = block_rows // seq_len                   # static (block is whole seqs)
    p = pos_ref[0:seq_len, :].astype(jnp.float32)  # (S, D) static slice
    e = (e.reshape(reps, seq_len, d) + p[None, :, :]).reshape(nb, d)

    # ---- segment embedding: (G-1) selects (a single select for G == 2) ----
    seg_ids = seg_ids_ref[...]                     # (NB, 1) int32
    seg_e = seg_ref[0:1, :].astype(jnp.float32)    # (1, D)
    for g in range(1, n_seg):                      # static, tiny
        row = seg_ref[g:g + 1, :].astype(jnp.float32)
        seg_e = jnp.where(seg_ids == g, row, seg_e)
    e = e + seg_e

    # ---- TF-style LayerNorm (f32 math; v5e has no bf16 VPU/EUP) ----------
    u = jnp.mean(e, axis=-1, keepdims=True)
    dev = e - u
    var = jnp.mean(dev * dev, axis=-1, keepdims=True)
    y = dev * lax.rsqrt(var + EPS)
    y = gamma_ref[...] * y + beta_ref[...]

    # TODO(synk): training-mode dropout would use pltpu.prng_seed /
    # pltpu.prng_random_bits; eval-mode dropout is the identity.
    out_ref[...] = y.astype(out_ref.dtype)


def _pick_rows_per_block(n_tokens, seq_len, target=1024):
    """Largest multiple of seq_len dividing n_tokens, <= target, sublane-legal."""
    best = n_tokens
    m = seq_len
    while m <= min(n_tokens, target):
        if n_tokens % m == 0 and (m % 8 == 0 or m == n_tokens):
            best = m
        m += seq_len
    return best


def embeddings_forward(x_ids, seg_ids, tok_tab, pos_tab, seg_tab, gamma, beta,
                       *, rows_per_block=None, out_dtype=jnp.float32):
    """x_ids, seg_ids: (B, S) int32.  Returns (B, S, D) in `out_dtype`."""
    B, S = x_ids.shape
    V, D = tok_tab.shape
    L = pos_tab.shape[0]
    G = seg_tab.shape[0]
    N = B * S
    assert L >= S, "sequence longer than pos_embed table"

    if rows_per_block is None:
        rows_per_block = _pick_rows_per_block(N, S)
    assert N % rows_per_block == 0, "rows_per_block must divide B*S"
    assert rows_per_block % S == 0, "rows_per_block must be a multiple of S"
    assert rows_per_block % 8 == 0 or rows_per_block == N, "sublane constraint"
    num_blocks = N // rows_per_block

    x_flat = x_ids.reshape(N).astype(jnp.int32)     # -> SMEM scalar prefetch
    s_flat = seg_ids.reshape(N, 1).astype(jnp.int32)
    gamma2 = gamma.reshape(1, D).astype(jnp.float32)
    beta2 = beta.reshape(1, D).astype(jnp.float32)

    kernel = functools.partial(embeddings_kernel, seq_len=S,
                               block_rows=rows_per_block)

    # Per-step VMEM footprint (double-buffered output, gather buffer, small
    # tables) + headroom; the vocab table never occupies VMEM.
    lanes = max(D, 128)
    tok_bytes = jnp.dtype(tok_tab.dtype).itemsize
    out_bytes = jnp.dtype(out_dtype).itemsize
    footprint = (2 * rows_per_block * lanes * out_bytes        # output tiles
                 + rows_per_block * lanes * max(tok_bytes, 4)  # gather scratch
                 + 2 * rows_per_block * 128 * 4                # (NB,1) seg ids
                 + 2 * max(L, 8) * lanes * 4                   # pos table
                 + 2 * max(G, 8) * lanes * 4                   # seg table
                 + 4 * 8 * lanes * 4)                          # gamma / beta
    vmem_limit = int(min(max(2 * footprint + (2 << 20), 16 << 20), 100 << 20))

    grid_spec = pltpu.PrefetchScalarGridSpec(
        num_scalar_prefetch=1,
        grid=(num_blocks,),
        in_specs=[
            pl.BlockSpec((rows_per_block, 1), lambda i, xids: (i, 0)),  # seg ids
            pl.BlockSpec(memory_space=pl.ANY),                          # tok table (HBM)
            pl.BlockSpec((L, D), lambda i, xids: (0, 0)),               # pos table
            pl.BlockSpec((G, D), lambda i, xids: (0, 0)),               # seg table
            pl.BlockSpec((1, D), lambda i, xids: (0, 0)),               # gamma
            pl.BlockSpec((1, D), lambda i, xids: (0, 0)),               # beta
        ],
        out_specs=pl.BlockSpec((rows_per_block, D), lambda i, xids: (i, 0)),
        scratch_shapes=[
            pltpu.VMEM((rows_per_block, D), tok_tab.dtype),
            pltpu.SemaphoreType.DMA((_NSEM,)),
        ])

    out_flat = pl.pallas_call(
        kernel,
        out_shape=jax.ShapeDtypeStruct((N, D), out_dtype),
        grid_spec=grid_spec,
        compiler_params=pltpu.CompilerParams(
            dimension_semantics=("parallel",),
            vmem_limit_bytes=vmem_limit),
    )(x_flat, s_flat, tok_tab, pos_tab, seg_tab, gamma2, beta2)

    return out_flat.reshape(B, S, D)


def embeddings_reference(x_ids, seg_ids, tok_tab, pos_tab, seg_tab, gamma, beta):
    B, S = x_ids.shape
    pos = jnp.arange(S, dtype=jnp.int32)[None, :]
    e = tok_tab[x_ids] + pos_tab[pos] + seg_tab[seg_ids]
    u = jnp.mean(e, axis=-1, keepdims=True)
    s = jnp.mean((e - u) ** 2, axis=-1, keepdims=True)
    y = (e - u) / jnp.sqrt(s + EPS)
    return gamma.reshape(1, 1, -1) * y + beta.reshape(1, 1, -1)


if __name__ == "__main__":
    # Module config: vocab_size=64, dim=32, max_len=16, n_segments=2, p_drop=0.1 (eval)
    VOCAB, DIM, MAX_LEN, N_SEG = 64, 32, 16, 2
    B, S = 2, 8

    key = jax.random.PRNGKey(0)
    k_tok, k_pos, k_seg, k_x, k_s = jax.random.split(key, 5)

    tok_tab = 0.02 * jax.random.normal(k_tok, (VOCAB, DIM), dtype=jnp.float32)
    pos_tab = 0.02 * jax.random.normal(k_pos, (MAX_LEN, DIM), dtype=jnp.float32)
    seg_tab = 0.02 * jax.random.normal(k_seg, (N_SEG, DIM), dtype=jnp.float32)
    gamma = jnp.ones((DIM,), dtype=jnp.float32)
    beta = jnp.zeros((DIM,), dtype=jnp.float32)

    x_ids = jax.random.randint(k_x, (B, S), 0, VOCAB, dtype=jnp.int32)
    seg_ids = jax.random.randint(k_s, (B, S), 0, N_SEG, dtype=jnp.int32)

    # rows_per_block=8 -> grid=(2,) "parallel": exercises pipelining and gives
    # v7x one block per TensorCore even at this toy size.
    out = embeddings_forward(x_ids, seg_ids, tok_tab, pos_tab, seg_tab, gamma,
                             beta, rows_per_block=8)
    out = jax.block_until_ready(out)

    ref = embeddings_reference(x_ids, seg_ids, tok_tab, pos_tab, seg_tab, gamma, beta)
    assert out.shape == (B, S, DIM)
    assert jnp.allclose(out, ref, atol=1e-5, rtol=1e-5), "mismatch vs reference"

    print("KERNEL_OK")
</pallas_src>

<mosaic_0001>
module attributes {stable_mosaic.version = 11 : i64} {
  func.func @embeddings_kernel(%arg0: i32, %arg1: memref<16xi32, #tpu.memory_space<smem>>, %arg2: memref<8x1xi32, #tpu.memory_space<vmem>>, %arg3: memref<64x32xf32, #tpu.memory_space<any>>, %arg4: memref<16x32xf32, #tpu.memory_space<vmem>>, %arg5: memref<2x32xf32, #tpu.memory_space<vmem>>, %arg6: memref<1x32xf32, #tpu.memory_space<vmem>>, %arg7: memref<1x32xf32, #tpu.memory_space<vmem>>, %arg8: memref<8x32xf32, #tpu.memory_space<vmem>>, %arg9: memref<8x32xf32, #tpu.memory_space<vmem>>, %arg10: memref<8x!tpu.dma_semaphore, #tpu.memory_space<semaphore_mem>>) attributes {dimension_semantics = [#tpu.dimension_semantics<parallel>], iteration_bounds = array<i64: 2>, scalar_prefetch = 1 : i64, scratch_operands = 2 : i64, tpu.core_type = #tpu.core_type<tc>, window_params = [{transform_indices = @transform_0, window_bounds = array<i64: 8, 1>}, {}, {pipeline_mode = #tpu.pipeline_mode<synchronous>, transform_indices = @transform_2, window_bounds = array<i64: 16, 32>}, {pipeline_mode = #tpu.pipeline_mode<synchronous>, transform_indices = @transform_3, window_bounds = array<i64: 2, 32>}, {pipeline_mode = #tpu.pipeline_mode<synchronous>, transform_indices = @transform_4, window_bounds = array<i64: 1, 32>}, {pipeline_mode = #tpu.pipeline_mode<synchronous>, transform_indices = @transform_5, window_bounds = array<i64: 1, 32>}, {transform_indices = @transform_6, window_bounds = array<i64: 8, 32>}]} {
    %c8_i32 = arith.constant 8 : i32
    %0 = arith.muli %arg0, %c8_i32 : i32
    %c0_i32 = arith.constant 0 : i32
    %1 = arith.addi %0, %c0_i32 : i32
    %2 = arith.index_cast %1 : i32 to index
    %3 = memref.load %arg1[%2] : memref<16xi32, #tpu.memory_space<smem>>
    %c0_i32_0 = arith.constant 0 : i32
    %c0_i32_1 = arith.constant 0 : i32
    %c0_i32_2 = arith.constant 0 : i32
    %4 = tpu.memref_slice %arg3[%3, %c0_i32_2] : memref<64x32xf32, #tpu.memory_space<any>> -> memref<1x32xf32, #tpu.memory_space<any>>
    %5 = tpu.memref_squeeze %4 : memref<1x32xf32, #tpu.memory_space<any>> -> memref<32xf32, #tpu.memory_space<any>>
    %c0_i32_3 = arith.constant 0 : i32
    %6 = tpu.memref_slice %arg9[%c0_i32_0, %c0_i32_3] : memref<8x32xf32, #tpu.memory_space<vmem>> -> memref<1x32xf32, #tpu.memory_space<vmem>>
    %7 = tpu.memref_squeeze %6 : memref<1x32xf32, #tpu.memory_space<vmem>> -> memref<32xf32, #tpu.memory_space<vmem>>
    %8 = tpu.memref_slice %arg10[%c0_i32_1] : memref<8x!tpu.dma_semaphore, #tpu.memory_space<semaphore_mem>> -> memref<1x!tpu.dma_semaphore, #tpu.memory_space<semaphore_mem>>
    %9 = tpu.memref_squeeze %8 : memref<1x!tpu.dma_semaphore, #tpu.memory_space<semaphore_mem>> -> memref<!tpu.dma_semaphore, #tpu.memory_space<semaphore_mem>>
    tpu.enqueue_dma source(%5 : memref<32xf32, #tpu.memory_space<any>>) target(%7 : memref<32xf32, #tpu.memory_space<vmem>>) target_semaphore(%9 : memref<!tpu.dma_semaphore, #tpu.memory_space<semaphore_mem>>)
    %c1_i32 = arith.constant 1 : i32
    %10 = arith.addi %0, %c1_i32 : i32
    %11 = arith.index_cast %10 : i32 to index
    %12 = memref.load %arg1[%11] : memref<16xi32, #tpu.memory_space<smem>>
    %c1_i32_4 = arith.constant 1 : i32
    %c1_i32_5 = arith.constant 1 : i32
    %c0_i32_6 = arith.constant 0 : i32
    %13 = tpu.memref_slice %arg3[%12, %c0_i32_6] : memref<64x32xf32, #tpu.memory_space<any>> -> memref<1x32xf32, #tpu.memory_space<any>>
    %14 = tpu.memref_squeeze %13 : memref<1x32xf32, #tpu.memory_space<any>> -> memref<32xf32, #tpu.memory_space<any>>
    %c0_i32_7 = arith.constant 0 : i32
    %15 = tpu.memref_slice %arg9[%c1_i32_4, %c0_i32_7] : memref<8x32xf32, #tpu.memory_space<vmem>> -> memref<1x32xf32, #tpu.memory_space<vmem>>
    %16 = tpu.memref_squeeze %15 : memref<1x32xf32, #tpu.memory_space<vmem>> -> memref<32xf32, #tpu.memory_space<vmem>>
    %17 = tpu.memref_slice %arg10[%c1_i32_5] : memref<8x!tpu.dma_semaphore, #tpu.memory_space<semaphore_mem>> -> memref<1x!tpu.dma_semaphore, #tpu.memory_space<semaphore_mem>>
    %18 = tpu.memref_squeeze %17 : memref<1x!tpu.dma_semaphore, #tpu.memory_space<semaphore_mem>> -> memref<!tpu.dma_semaphore, #tpu.memory_space<semaphore_mem>>
    tpu.enqueue_dma source(%14 : memref<32xf32, #tpu.memory_space<any>>) target(%16 : memref<32xf32, #tpu.memory_space<vmem>>) target_semaphore(%18 : memref<!tpu.dma_semaphore, #tpu.memory_space<semaphore_mem>>)
    %c2_i32 = arith.constant 2 : i32
    %19 = arith.addi %0, %c2_i32 : i32
    %20 = arith.index_cast %19 : i32 to index
    %21 = memref.load %arg1[%20] : memref<16xi32, #tpu.memory_space<smem>>
    %c2_i32_8 = arith.constant 2 : i32
    %c2_i32_9 = arith.constant 2 : i32
    %c0_i32_10 = arith.constant 0 : i32
    %22 = tpu.memref_slice %arg3[%21, %c0_i32_10] : memref<64x32xf32, #tpu.memory_space<any>> -> memref<1x32xf32, #tpu.memory_space<any>>
    %23 = tpu.memref_squeeze %22 : memref<1x32xf32, #tpu.memory_space<any>> -> memref<32xf32, #tpu.memory_space<any>>
    %c0_i32_11 = arith.constant 0 : i32
    %24 = tpu.memref_slice %arg9[%c2_i32_8, %c0_i32_11] : memref<8x32xf32, #tpu.memory_space<vmem>> -> memref<1x32xf32, #tpu.memory_space<vmem>>
    %25 = tpu.memref_squeeze %24 : memref<1x32xf32, #tpu.memory_space<vmem>> -> memref<32xf32, #tpu.memory_space<vmem>>
    %26 = tpu.memref_slice %arg10[%c2_i32_9] : memref<8x!tpu.dma_semaphore, #tpu.memory_space<semaphore_mem>> -> memref<1x!tpu.dma_semaphore, #tpu.memory_space<semaphore_mem>>
    %27 = tpu.memref_squeeze %26 : memref<1x!tpu.dma_semaphore, #tpu.memory_space<semaphore_mem>> -> memref<!tpu.dma_semaphore, #tpu.memory_space<semaphore_mem>>
    tpu.enqueue_dma source(%23 : memref<32xf32, #tpu.memory_space<any>>) target(%25 : memref<32xf32, #tpu.memory_space<vmem>>) target_semaphore(%27 : memref<!tpu.dma_semaphore, #tpu.memory_space<semaphore_mem>>)
    %c3_i32 = arith.constant 3 : i32
    %28 = arith.addi %0, %c3_i32 : i32
    %29 = arith.index_cast %28 : i32 to index
    %30 = memref.load %arg1[%29] : memref<16xi32, #tpu.memory_space<smem>>
    %c3_i32_12 = arith.constant 3 : i32
    %c3_i32_13 = arith.constant 3 : i32
    %c0_i32_14 = arith.constant 0 : i32
    %31 = tpu.memref_slice %arg3[%30, %c0_i32_14] : memref<64x32xf32, #tpu.memory_space<any>> -> memref<1x32xf32, #tpu.memory_space<any>>
    %32 = tpu.memref_squeeze %31 : memref<1x32xf32, #tpu.memory_space<any>> -> memref<32xf32, #tpu.memory_space<any>>
    %c0_i32_15 = arith.constant 0 : i32
    %33 = tpu.memref_slice %arg9[%c3_i32_12, %c0_i32_15] : memref<8x32xf32, #tpu.memory_space<vmem>> -> memref<1x32xf32, #tpu.memory_space<vmem>>
    %34 = tpu.memref_squeeze %33 : memref<1x32xf32, #tpu.memory_space<vmem>> -> memref<32xf32, #tpu.memory_space<vmem>>
    %35 = tpu.memref_slice %arg10[%c3_i32_13] : memref<8x!tpu.dma_semaphore, #tpu.memory_space<semaphore_mem>> -> memref<1x!tpu.dma_semaphore, #tpu.memory_space<semaphore_mem>>
    %36 = tpu.memref_squeeze %35 : memref<1x!tpu.dma_semaphore, #tpu.memory_space<semaphore_mem>> -> memref<!tpu.dma_semaphore, #tpu.memory_space<semaphore_mem>>
    tpu.enqueue_dma source(%32 : memref<32xf32, #tpu.memory_space<any>>) target(%34 : memref<32xf32, #tpu.memory_space<vmem>>) target_semaphore(%36 : memref<!tpu.dma_semaphore, #tpu.memory_space<semaphore_mem>>)
    %c4_i32 = arith.constant 4 : i32
    %37 = arith.addi %0, %c4_i32 : i32
    %38 = arith.index_cast %37 : i32 to index
    %39 = memref.load %arg1[%38] : memref<16xi32, #tpu.memory_space<smem>>
    %c4_i32_16 = arith.constant 4 : i32
    %c4_i32_17 = arith.constant 4 : i32
    %c0_i32_18 = arith.constant 0 : i32
    %40 = tpu.memref_slice %arg3[%39, %c0_i32_18] : memref<64x32xf32, #tpu.memory_space<any>> -> memref<1x32xf32, #tpu.memory_space<any>>
    %41 = tpu.memref_squeeze %40 : memref<1x32xf32, #tpu.memory_space<any>> -> memref<32xf32, #tpu.memory_space<any>>
    %c0_i32_19 = arith.constant 0 : i32
    %42 = tpu.memref_slice %arg9[%c4_i32_16, %c0_i32_19] : memref<8x32xf32, #tpu.memory_space<vmem>> -> memref<1x32xf32, #tpu.memory_space<vmem>>
    %43 = tpu.memref_squeeze %42 : memref<1x32xf32, #tpu.memory_space<vmem>> -> memref<32xf32, #tpu.memory_space<vmem>>
    %44 = tpu.memref_slice %arg10[%c4_i32_17] : memref<8x!tpu.dma_semaphore, #tpu.memory_space<semaphore_mem>> -> memref<1x!tpu.dma_semaphore, #tpu.memory_space<semaphore_mem>>
    %45 = tpu.memref_squeeze %44 : memref<1x!tpu.dma_semaphore, #tpu.memory_space<semaphore_mem>> -> memref<!tpu.dma_semaphore, #tpu.memory_space<semaphore_mem>>
    tpu.enqueue_dma source(%41 : memref<32xf32, #tpu.memory_space<any>>) target(%43 : memref<32xf32, #tpu.memory_space<vmem>>) target_semaphore(%45 : memref<!tpu.dma_semaphore, #tpu.memory_space<semaphore_mem>>)
    %c5_i32 = arith.constant 5 : i32
    %46 = arith.addi %0, %c5_i32 : i32
    %47 = arith.index_cast %46 : i32 to index
    %48 = memref.load %arg1[%47] : memref<16xi32, #tpu.memory_space<smem>>
    %c5_i32_20 = arith.constant 5 : i32
    %c5_i32_21 = arith.constant 5 : i32
    %c0_i32_22 = arith.constant 0 : i32
    %49 = tpu.memref_slice %arg3[%48, %c0_i32_22] : memref<64x32xf32, #tpu.memory_space<any>> -> memref<1x32xf32, #tpu.memory_space<any>>
    %50 = tpu.memref_squeeze %49 : memref<1x32xf32, #tpu.memory_space<any>> -> memref<32xf32, #tpu.memory_space<any>>
    %c0_i32_23 = arith.constant 0 : i32
    %51 = tpu.memref_slice %arg9[%c5_i32_20, %c0_i32_23] : memref<8x32xf32, #tpu.memory_space<vmem>> -> memref<1x32xf32, #tpu.memory_space<vmem>>
    %52 = tpu.memref_squeeze %51 : memref<1x32xf32, #tpu.memory_space<vmem>> -> memref<32xf32, #tpu.memory_space<vmem>>
    %53 = tpu.memref_slice %arg10[%c5_i32_21] : memref<8x!tpu.dma_semaphore, #tpu.memory_space<semaphore_mem>> -> memref<1x!tpu.dma_semaphore, #tpu.memory_space<semaphore_mem>>
    %54 = tpu.memref_squeeze %53 : memref<1x!tpu.dma_semaphore, #tpu.memory_space<semaphore_mem>> -> memref<!tpu.dma_semaphore, #tpu.memory_space<semaphore_mem>>
    tpu.enqueue_dma source(%50 : memref<32xf32, #tpu.memory_space<any>>) target(%52 : memref<32xf32, #tpu.memory_space<vmem>>) target_semaphore(%54 : memref<!tpu.dma_semaphore, #tpu.memory_space<semaphore_mem>>)
    %c6_i32 = arith.constant 6 : i32
    %55 = arith.addi %0, %c6_i32 : i32
    %56 = arith.index_cast %55 : i32 to index
    %57 = memref.load %arg1[%56] : memref<16xi32, #tpu.memory_space<smem>>
    %c6_i32_24 = arith.constant 6 : i32
    %c6_i32_25 = arith.constant 6 : i32
    %c0_i32_26 = arith.constant 0 : i32
    %58 = tpu.memref_slice %arg3[%57, %c0_i32_26] : memref<64x32xf32, #tpu.memory_space<any>> -> memref<1x32xf32, #tpu.memory_space<any>>
    %59 = tpu.memref_squeeze %58 : memref<1x32xf32, #tpu.memory_space<any>> -> memref<32xf32, #tpu.memory_space<any>>
    %c0_i32_27 = arith.constant 0 : i32
    %60 = tpu.memref_slice %arg9[%c6_i32_24, %c0_i32_27] : memref<8x32xf32, #tpu.memory_space<vmem>> -> memref<1x32xf32, #tpu.memory_space<vmem>>
    %61 = tpu.memref_squeeze %60 : memref<1x32xf32, #tpu.memory_space<vmem>> -> memref<32xf32, #tpu.memory_space<vmem>>
    %62 = tpu.memref_slice %arg10[%c6_i32_25] : memref<8x!tpu.dma_semaphore, #tpu.memory_space<semaphore_mem>> -> memref<1x!tpu.dma_semaphore, #tpu.memory_space<semaphore_mem>>
    %63 = tpu.memref_squeeze %62 : memref<1x!tpu.dma_semaphore, #tpu.memory_space<semaphore_mem>> -> memref<!tpu.dma_semaphore, #tpu.memory_space<semaphore_mem>>
    tpu.enqueue_dma source(%59 : memref<32xf32, #tpu.memory_space<any>>) target(%61 : memref<32xf32, #tpu.memory_space<vmem>>) target_semaphore(%63 : memref<!tpu.dma_semaphore, #tpu.memory_space<semaphore_mem>>)
    %c7_i32 = arith.constant 7 : i32
    %64 = arith.addi %0, %c7_i32 : i32
    %65 = arith.index_cast %64 : i32 to index
    %66 = memref.load %arg1[%65] : memref<16xi32, #tpu.memory_space<smem>>
    %c7_i32_28 = arith.constant 7 : i32
    %c7_i32_29 = arith.constant 7 : i32
    %c0_i32_30 = arith.constant 0 : i32
    %67 = tpu.memref_slice %arg3[%66, %c0_i32_30] : memref<64x32xf32, #tpu.memory_space<any>> -> memref<1x32xf32, #tpu.memory_space<any>>
    %68 = tpu.memref_squeeze %67 : memref<1x32xf32, #tpu.memory_space<any>> -> memref<32xf32, #tpu.memory_space<any>>
    %c0_i32_31 = arith.constant 0 : i32
    %69 = tpu.memref_slice %arg9[%c7_i32_28, %c0_i32_31] : memref<8x32xf32, #tpu.memory_space<vmem>> -> memref<1x32xf32, #tpu.memory_space<vmem>>
    %70 = tpu.memref_squeeze %69 : memref<1x32xf32, #tpu.memory_space<vmem>> -> memref<32xf32, #tpu.memory_space<vmem>>
    %71 = tpu.memref_slice %arg10[%c7_i32_29] : memref<8x!tpu.dma_semaphore, #tpu.memory_space<semaphore_mem>> -> memref<1x!tpu.dma_semaphore, #tpu.memory_space<semaphore_mem>>
    %72 = tpu.memref_squeeze %71 : memref<1x!tpu.dma_semaphore, #tpu.memory_space<semaphore_mem>> -> memref<!tpu.dma_semaphore, #tpu.memory_space<semaphore_mem>>
    tpu.enqueue_dma source(%68 : memref<32xf32, #tpu.memory_space<any>>) target(%70 : memref<32xf32, #tpu.memory_space<vmem>>) target_semaphore(%72 : memref<!tpu.dma_semaphore, #tpu.memory_space<semaphore_mem>>)
    %c0_i32_32 = arith.constant 0 : i32
    %c8_i32_33 = arith.constant 8 : i32
    %73 = arith.addi %c0_i32_32, %c8_i32_33 : i32
    %c1_i32_34 = arith.constant 1 : i32
    scf.for %arg11 = %c0_i32_32 to %73 step %c1_i32_34  : i32 {
      %c1_i32_55 = arith.constant 1 : i32
      %116 = arith.muli %arg11, %c1_i32_55 : i32
      %c0_i32_56 = arith.constant 0 : i32
      %117 = arith.addi %c0_i32_56, %116 : i32
      %c8_i32_57 = arith.constant 8 : i32
      %c0_i32_58 = arith.constant 0 : i32
      %118 = arith.cmpi eq, %c8_i32_57, %c0_i32_58 : i32
      %c1_i32_59 = arith.constant 1 : i32
      %119 = arith.select %118, %c1_i32_59, %c8_i32_57 : i32
      %120 = arith.remsi %117, %119 : i32
      %c0_i32_60 = arith.constant 0 : i32
      %121 = arith.cmpi ne, %120, %c0_i32_60 : i32
      %c0_i32_61 = arith.constant 0 : i32
      %122 = arith.cmpi slt, %120, %c0_i32_61 : i32
      %c0_i32_62 = arith.constant 0 : i32
      %123 = arith.cmpi slt, %119, %c0_i32_62 : i32
      %124 = arith.xori %122, %123 : i1
      %125 = arith.andi %124, %121 : i1
      %126 = arith.addi %120, %119 : i32
      %127 = arith.select %125, %126, %120 : i32
      %c0_i32_63 = arith.constant 0 : i32
      %c0_i32_64 = arith.constant 0 : i32
      %128 = tpu.memref_slice %arg3[%c0_i32_63, %c0_i32_64] : memref<64x32xf32, #tpu.memory_space<any>> -> memref<1x32xf32, #tpu.memory_space<any>>
      %129 = tpu.memref_squeeze %128 : memref<1x32xf32, #tpu.memory_space<any>> -> memref<32xf32, #tpu.memory_space<any>>
      %c0_i32_65 = arith.constant 0 : i32
      %130 = tpu.memref_slice %arg9[%117, %c0_i32_65] : memref<8x32xf32, #tpu.memory_space<vmem>> -> memref<1x32xf32, #tpu.memory_space<vmem>>
      %131 = tpu.memref_squeeze %130 : memref<1x32xf32, #tpu.memory_space<vmem>> -> memref<32xf32, #tpu.memory_space<vmem>>
      %132 = tpu.memref_slice %arg10[%127] : memref<8x!tpu.dma_semaphore, #tpu.memory_space<semaphore_mem>> -> memref<1x!tpu.dma_semaphore, #tpu.memory_space<semaphore_mem>>
      %133 = tpu.memref_squeeze %132 : memref<1x!tpu.dma_semaphore, #tpu.memory_space<semaphore_mem>> -> memref<!tpu.dma_semaphore, #tpu.memory_space<semaphore_mem>>
      tpu.wait_dma2 semaphore(%133 : memref<!tpu.dma_semaphore, #tpu.memory_space<semaphore_mem>>) src(%129 : memref<32xf32, #tpu.memory_space<any>>) dst(%131 : memref<32xf32, #tpu.memory_space<vmem>>)
      %c8_i32_66 = arith.constant 8 : i32
      %134 = arith.addi %117, %c8_i32_66 : i32
      %c8_i32_67 = arith.constant 8 : i32
      %135 = arith.cmpi slt, %134, %c8_i32_67 : i32
      %136 = arith.extui %135 : i1 to i32
      %c0_i32_68 = arith.constant 0 : i32
      %137 = arith.cmpi ne, %136, %c0_i32_68 : i32
      scf.if %137 {
        %c8_i32_69 = arith.constant 8 : i32
        %138 = arith.addi %117, %c8_i32_69 : i32
        %139 = arith.addi %0, %138 : i32
        %140 = arith.index_cast %139 : i32 to index
        %141 = memref.load %arg1[%140] : memref<16xi32, #tpu.memory_space<smem>>
        %c8_i32_70 = arith.constant 8 : i32
        %c0_i32_71 = arith.constant 0 : i32
        %142 = arith.cmpi eq, %c8_i32_70, %c0_i32_71 : i32
        %c1_i32_72 = arith.constant 1 : i32
        %143 = arith.select %142, %c1_i32_72, %c8_i32_70 : i32
        %144 = arith.remsi %138, %143 : i32
        %c0_i32_73 = arith.constant 0 : i32
        %145 = arith.cmpi ne, %144, %c0_i32_73 : i32
        %c0_i32_74 = arith.constant 0 : i32
        %146 = arith.cmpi slt, %144, %c0_i32_74 : i32
        %c0_i32_75 = arith.constant 0 : i32
        %147 = arith.cmpi slt, %143, %c0_i32_75 : i32
        %148 = arith.xori %146, %147 : i1
        %149 = arith.andi %148, %145 : i1
        %150 = arith.addi %144, %143 : i32
        %151 = arith.select %149, %150, %144 : i32
        %c0_i32_76 = arith.constant 0 : i32
        %152 = tpu.memref_slice %arg3[%141, %c0_i32_76] : memref<64x32xf32, #tpu.memory_space<any>> -> memref<1x32xf32, #tpu.memory_space<any>>
        %153 = tpu.memref_squeeze %152 : memref<1x32xf32, #tpu.memory_space<any>> -> memref<32xf32, #tpu.memory_space<any>>
        %c0_i32_77 = arith.constant 0 : i32
        %154 = tpu.memref_slice %arg9[%138, %c0_i32_77] : memref<8x32xf32, #tpu.memory_space<vmem>> -> memref<1x32xf32, #tpu.memory_space<vmem>>
        %155 = tpu.memref_squeeze %154 : memref<1x32xf32, #tpu.memory_space<vmem>> -> memref<32xf32, #tpu.memory_space<vmem>>
        %156 = tpu.memref_slice %arg10[%151] : memref<8x!tpu.dma_semaphore, #tpu.memory_space<semaphore_mem>> -> memref<1x!tpu.dma_semaphore, #tpu.memory_space<semaphore_mem>>
        %157 = tpu.memref_squeeze %156 : memref<1x!tpu.dma_semaphore, #tpu.memory_space<semaphore_mem>> -> memref<!tpu.dma_semaphore, #tpu.memory_space<semaphore_mem>>
        tpu.enqueue_dma source(%153 : memref<32xf32, #tpu.memory_space<any>>) target(%155 : memref<32xf32, #tpu.memory_space<vmem>>) target_semaphore(%157 : memref<!tpu.dma_semaphore, #tpu.memory_space<semaphore_mem>>)
      } else {
      }
    }
    %c8_i32_35 = arith.constant 8 : i32
    %c0 = arith.constant 0 : index
    %c0_36 = arith.constant 0 : index
    %74 = vector.load %arg9[%c0, %c0_36] : memref<8x32xf32, #tpu.memory_space<vmem>>, vector<8x32xf32>
    %c0_37 = arith.constant 0 : index
    %c0_38 = arith.constant 0 : index
    %75 = vector.load %arg4[%c0_37, %c0_38] : memref<16x32xf32, #tpu.memory_space<vmem>>, vector<8x32xf32>
    %76 = vector.shape_cast %74 : vector<8x32xf32> to vector<1x8x32xf32>
    %77 = vector.shape_cast %75 : vector<8x32xf32> to vector<1x8x32xf32>
    %78 = arith.addf %76, %77 : vector<1x8x32xf32>
    %79 = vector.shape_cast %78 : vector<1x8x32xf32> to vector<8x32xf32>
    %c0_39 = arith.constant 0 : index
    %c0_40 = arith.constant 0 : index
    %80 = vector.load %arg2[%c0_39, %c0_40] : memref<8x1xi32, #tpu.memory_space<vmem>>, vector<8x1xi32>
    %c0_41 = arith.constant 0 : index
    %c0_42 = arith.constant 0 : index
    %81 = vector.load %arg5[%c0_41, %c0_42] : memref<2x32xf32, #tpu.memory_space<vmem>>, vector<1x32xf32>
    %c1 = arith.constant 1 : index
    %c0_43 = arith.constant 0 : index
    %82 = vector.load %arg5[%c1, %c0_43] : memref<2x32xf32, #tpu.memory_space<vmem>>, vector<1x32xf32>
    %c1_i32_44 = arith.constant 1 : i32
    %83 = vector.broadcast %c1_i32_44 : i32 to vector<8x1xi32>
    %84 = arith.cmpi eq, %80, %83 : vector<8x1xi32>
    %85 = vector.shape_cast %84 : vector<8x1xi1> to vector<8x1xi1>
    %86 = vector.broadcast %85 : vector<8x1xi1> to vector<8x32xi1>
    %87 = vector.shape_cast %82 : vector<1x32xf32> to vector<1x32xf32>
    %88 = vector.broadcast %87 : vector<1x32xf32> to vector<8x32xf32>
    %89 = vector.shape_cast %81 : vector<1x32xf32> to vector<1x32xf32>
    %90 = vector.broadcast %89 : vector<1x32xf32> to vector<8x32xf32>
    %91 = arith.select %86, %88, %90 : vector<8x32xi1>, vector<8x32xf32>
    %92 = arith.addf %79, %91 : vector<8x32xf32>
    %cst = arith.constant dense<0.000000e+00> : vector<8xf32>
    %93 = vector.multi_reduction <add>, %92, %cst [1] : vector<8x32xf32> to vector<8xf32>
    %94 = vector.shape_cast %93 : vector<8xf32> to vector<8x1xf32>
    %cst_45 = arith.constant 3.200000e+01 : f32
    %95 = vector.broadcast %cst_45 : f32 to vector<8x1xf32>
    %96 = arith.divf %94, %95 : vector<8x1xf32>
    %97 = vector.broadcast %96 : vector<8x1xf32> to vector<8x32xf32>
    %98 = arith.subf %92, %97 : vector<8x32xf32>
    %99 = arith.mulf %98, %98 : vector<8x32xf32>
    %cst_46 = arith.constant dense<0.000000e+00> : vector<8xf32>
    %100 = vector.multi_reduction <add>, %99, %cst_46 [1] : vector<8x32xf32> to vector<8xf32>
    %101 = vector.shape_cast %100 : vector<8xf32> to vector<8x1xf32>
    %cst_47 = arith.constant 3.200000e+01 : f32
    %102 = vector.broadcast %cst_47 : f32 to vector<8x1xf32>
    %103 = arith.divf %101, %102 : vector<8x1xf32>
    %cst_48 = arith.constant 9.99999996E-13 : f32
    %104 = vector.broadcast %cst_48 : f32 to vector<8x1xf32>
    %105 = arith.addf %103, %104 : vector<8x1xf32>
    %106 = math.rsqrt %105 : vector<8x1xf32>
    %107 = vector.broadcast %106 : vector<8x1xf32> to vector<8x32xf32>
    %108 = arith.mulf %98, %107 : vector<8x32xf32>
    %c0_49 = arith.constant 0 : index
    %c0_50 = arith.constant 0 : index
    %109 = vector.load %arg6[%c0_49, %c0_50] : memref<1x32xf32, #tpu.memory_space<vmem>>, vector<1x32xf32>
    %110 = vector.broadcast %109 : vector<1x32xf32> to vector<8x32xf32>
    %111 = arith.mulf %110, %108 : vector<8x32xf32>
    %c0_51 = arith.constant 0 : index
    %c0_52 = arith.constant 0 : index
    %112 = vector.load %arg7[%c0_51, %c0_52] : memref<1x32xf32, #tpu.memory_space<vmem>>, vector<1x32xf32>
    %113 = vector.broadcast %112 : vector<1x32xf32> to vector<8x32xf32>
    %114 = arith.addf %111, %113 : vector<8x32xf32>
    %c0_53 = arith.constant 0 : index
    %c0_54 = arith.constant 0 : index
    %115 = vector.load %arg8[%c0_53, %c0_54] : memref<8x32xf32, #tpu.memory_space<vmem>>, vector<8x32xf32>
    tpu.vector_store %arg8[%c0_53, %c0_54], %114 {strides = array<i32>} : memref<8x32xf32, #tpu.memory_space<vmem>>, vector<8x32xf32>,
    return
  }
  func.func @transform_0(%arg0: i32, %arg1: memref<16xi32, #tpu.memory_space<smem>>) -> (i32, i32) {
    %c0_i32 = arith.constant 0 : i32
    %c0_i32_0 = arith.constant 0 : i32
    return %arg0, %c0_i32 : i32, i32
  }
  func.func @transform_2(%arg0: i32, %arg1: memref<16xi32, #tpu.memory_space<smem>>) -> (i32, i32) {
    %c0_i32 = arith.constant 0 : i32
    %c0_i32_0 = arith.constant 0 : i32
    %c0_i32_1 = arith.constant 0 : i32
    return %c0_i32, %c0_i32_0 : i32, i32
  }
  func.func @transform_3(%arg0: i32, %arg1: memref<16xi32, #tpu.memory_space<smem>>) -> (i32, i32) {
    %c0_i32 = arith.constant 0 : i32
    %c0_i32_0 = arith.constant 0 : i32
    %c0_i32_1 = arith.constant 0 : i32
    return %c0_i32, %c0_i32_0 : i32, i32
  }
  func.func @transform_4(%arg0: i32, %arg1: memref<16xi32, #tpu.memory_space<smem>>) -> (i32, i32) {
    %c0_i32 = arith.constant 0 : i32
    %c0_i32_0 = arith.constant 0 : i32
    %c0_i32_1 = arith.constant 0 : i32
    return %c0_i32, %c0_i32_0 : i32, i32
  }
  func.func @transform_5(%arg0: i32, %arg1: memref<16xi32, #tpu.memory_space<smem>>) -> (i32, i32) {
    %c0_i32 = arith.constant 0 : i32
    %c0_i32_0 = arith.constant 0 : i32
    %c0_i32_1 = arith.constant 0 : i32
    return %c0_i32, %c0_i32_0 : i32, i32
  }
  func.func @transform_6(%arg0: i32, %arg1: memref<16xi32, #tpu.memory_space<smem>>) -> (i32, i32) {
    %c0_i32 = arith.constant 0 : i32
    %c0_i32_0 = arith.constant 0 : i32
    return %arg0, %c0_i32 : i32, i32
  }
}

</mosaic_0001>

<bundles_post_ra>
// kernel: tpu_custom_call.1
= control target key start
LH: loop header
LB: loop body
LE: loop exit
PB: predicated region body
PF: predicated region fallthrough
CT: control target
= control target key end

     0   :  { %s1405_s0 = inlined_call_operand.vmem [shape: s32[16], index: 0, kind: input, shape index: {}]   ;;  %s1406_s1 = inlined_call_operand.vmem [shape: s32[16,1], index: 1, kind: input, shape index: {}]   ;;  %s1407_s2 = inlined_call_operand.vmem [shape: f32[64,32], index: 2, kind: input, shape index: {}]   ;;  %s1408_s3 = inlined_call_operand.vmem [shape: f32[16,32], index: 3, kind: input, shape index: {}]   ;;  %s1409_s4 = inlined_call_operand.vmem [shape: f32[2,32], index: 4, kind: input, shape index: {}]   ;;  %s1410_s5 = inlined_call_operand.vmem [shape: f32[1,32], index: 5, kind: input, shape index: {}]   ;;  %s1411_s6 = inlined_call_operand.vmem [shape: f32[1,32], index: 6, kind: input, shape index: {}]   ;;  %s1412_s7 = inlined_call_operand.hbm [shape: f32[16,32], index: 7, kind: output, shape index: {}]  }
   0x1   :  { %1414 = sst [smem:[#allocation21_spill]] %s1406_s1  ;;  %s12_s26 = sshll.u32 %s1405_s0, 4  ;;  %s13_s26 = int_to_ptr.vmem [resolvable:$true] %s12_s26 }
   0x2   :  { %s1087_s27 = scalar_lea.vmem %s13_s26, 16  ;;  %p1092_p1 = scmp.lt.s32.totalorder %s13_s26, %s13_s26 }
   0x3   :  { %p1088_p0 = scmp.ne.s32.totalorder %s13_s26, %s1087_s27  ;;  %p1093_p2 = scmp.lt.s32.totalorder %s1087_s27, %s1087_s27 }
   0x5   :  { %p1094_p3 = por %p1093_p2, %p1092_p1 }
   0x7   :  { %p1095_p4 = pnand %p1094_p3, %p1088_p0 }
   0x9   :  { %1098 = shalt.err (!%p1095_p4)  }
   0xa   :  { %s1175_s28 = smov [#allocation5]  }
   0xb   :  { %15 = dma.vmem_to_smem %s13_s26, 16, %s1175_s28, [#allocation4] }
   0xc   :  { %1147 = dma.done.wait [#allocation4], 16 }
   0xd   :  { %1148 = vsyncadd [#allocation4], 4294967280 }
   0xe   :  { %17 = sfence }
   0xf   :  { %18 = vsyncpa [#allocation7], 0 }
  0x10   :  { %20 = vsyncpa [#allocation7 + $0x1], 0  ;;  %s1221_s29 = smov 0   ;;  %s1223_s30 = smov 0  }
  0x11   :  { %s1225_s0 = smov 0   ;;  %s1227_s8 = smov 0  }
  0x12 LB: > { %s1242_s9 = sadd.s32 4294967295, %s1169_s8   ;;  %s1003_s10 = sadd.s32 4294967294, %s1169_s8   ;;  %s1169_s8 = sphi %s1227_s8, %s1426_s8   ;;  %s1165_s0 = sphi %s1225_s0, %s1425_s0   ;;  %s1161_s30 = sphi %s1223_s30, %s1424_s30   ;;  %s1157_s29 = sphi %s1221_s29, %s1423_s29  }
  0x13   : > { %s1246_s11 = sadd.s32 1, %s1169_s8   ;;  %s143_s12 = sadd.s32 1, %s1165_s0 }
  0x14   : > { %s140_s13 = ssub.s32 %s1169_s8, %s1246_s11  ;;  %p153_p5 = scmp.ne.s32.totalorder %s1165_s0, %s1161_s30 }
  0x15   : > { %p141_p6 = scmp.eq.s32.totalorder %s140_s13, 0  ;;  %p154_p7 = scmp.eq.s32.totalorder %s1242_s9, 1 }
  0x16   : > { %p159_p8 = scmp.ne.s32.totalorder %s1161_s30, %s1157_s29  ;;  %p160_p9 = scmp.eq.s32.totalorder %s1003_s10, 1 }
  0x17   : > { %s1257_s14 = scalar_select %p141_p6, %s1165_s0, %s143_s12  }
  0x18   : > { %p1259_p10 = por %p154_p7, %p153_p5  ;;  %p1263_p11 = por %p160_p9, %p159_p8 }
  0x19   : > { %1415 = sst [smem:[#allocation20_spill]] %s1257_s14  ;;  %p1006_p12 = scmp.ge.s32.totalorder %s1169_s8, 1 }
  0x1a   : > { %p197_p13 = scmp.lt.s32.totalorder %s1169_s8, 3 }
  0x1c   : > { %p198_p0 = pnand %p1006_p12, %p197_p13 }
  0x1d   : > { %s1413_s17 = sand.u32 (!%p198_p0), 1, %s1161_s30   ;;  %p224_p1 = scmp.lt.s32.totalorder (!%p198_p0), %s1242_s9, 1 }
  0x1e   : > { %201 = sbr.rel (%p198_p0) target bundleno = 602 (0x25a), region = 40  ;;  %s1273_s18 = sshll.u32 (!%p198_p0), %s1413_s17, 3 }
  0x1f   : > { %s1276_s19 = sshll.u32 (!%p198_p0), %s1242_s9, 3  ;;  %s1418_s1 = sld [smem:[#allocation21_spill]] (!%p198_p0) }
  0x20   : > { %s229_s20 = sld [smem:[#allocation5 + %s1276_s19]] (!%p198_p0) }
  0x25   : > { %s225_s21 = scalar_select %p224_p1, %s1242_s9, 1 }
  0x26   : > { %s230_s28 = scalar_lea.vmem %s1407_s2, %s229_s20 }
  0x27   : > { %s1008_s22 = sshll.u32 %s225_s21, 3  ;;  %v248_v0 = vld [vmem:[%s230_s28] sm:$0x1] }
  0x28   : > { %s1283_s25 = scalar_lea.vmem %s1418_s1, %s1008_s22  ;;  %249 = vst [vmem:[#allocation2] sm:$0x1] %v248_v0 }
  0x29   : > { %274 = vsyncadd [#allocation3], 16  ;;  %s275_s12 = sadd.s32 1, %s1276_s19 }
  0x2a   : > { %s276_s13 = sld [smem:[#allocation5 + %s275_s12]] }
  0x30   : > { %s277_s21 = scalar_lea.vmem %s1407_s2, %s276_s13 }
  0x31   : > { %v297_v1 = vld [vmem:[%s277_s21] sm:$0x1] }
  0x32   : > { %298 = vst [vmem:[#allocation2 + $0x1] sm:$0x1] %v297_v1 }
  0x33   : > { %323 = vsyncadd [#allocation3 + $0x1], 16  ;;  %s324_s22 = sadd.s32 2, %s1276_s19 }
  0x34   : > { %s325_s23 = sld [smem:[#allocation5 + %s324_s22]] }
  0x3a   : > { %s326_s20 = scalar_lea.vmem %s1407_s2, %s325_s23 }
  0x3b   : > { %v346_v2 = vld [vmem:[%s326_s20] sm:$0x1] }
  0x3c   : > { %347 = vst [vmem:[#allocation2 + $0x2] sm:$0x1] %v346_v2 }
  0x3d   : > { %372 = vsyncadd [#allocation3 + $0x2], 16  ;;  %s373_s27 = sadd.s32 3, %s1276_s19 }
  0x3e   : > { %s374_s28 = sld [smem:[#allocation5 + %s373_s27]] }
  0x44   : > { %s375_s14 = scalar_lea.vmem %s1407_s2, %s374_s28 }
  0x45   : > { %v395_v3 = vld [vmem:[%s375_s14] sm:$0x1] }
  0x46   : > { %396 = vst [vmem:[#allocation2 + $0x3] sm:$0x1] %v395_v3 }
  0x47   : > { %421 = vsyncadd [#allocation3 + $0x3], 16  ;;  %s422_s17 = sadd.s32 4, %s1276_s19 }
  0x48   : > { %s423_s13 = sld [smem:[#allocation5 + %s422_s17]] }
  0x4e   : > { %s424_s23 = scalar_lea.vmem %s1407_s2, %s423_s13 }
  0x4f   : > { %v444_v4 = vld [vmem:[%s424_s23] sm:$0x1] }
  0x50   : > { %445 = vst [vmem:[#allocation2 + $0x4] sm:$0x1] %v444_v4 }
  0x51   : > { %470 = vsyncadd [#allocation3 + $0x4], 16  ;;  %s471_s24 = sadd.s32 5, %s1276_s19 }
  0x52   : > { %s472_s26 = sld [smem:[#allocation5 + %s471_s24]] }
  0x58   : > { %s473_s10 = scalar_lea.vmem %s1407_s2, %s472_s26 }
  0x59   : > { %v493_v5 = vld [vmem:[%s473_s10] sm:$0x1] }
  0x5a   : > { %494 = vst [vmem:[#allocation2 + $0x5] sm:$0x1] %v493_v5 }
  0x5b   : > { %519 = vsyncadd [#allocation3 + $0x5], 16  ;;  %s520_s28 = sadd.s32 6, %s1276_s19 }
  0x5c   : > { %s521_s12 = sld [smem:[#allocation5 + %s520_s28]] }
  0x62   : > { %s522_s13 = scalar_lea.vmem %s1407_s2, %s521_s12 }
  0x63   : > { %v542_v6 = vld [vmem:[%s522_s13] sm:$0x1] }
  0x64   : > { %543 = vst [vmem:[#allocation2 + $0x6] sm:$0x1] %v542_v6 }
  0x65   : > { %568 = vsyncadd [#allocation3 + $0x6], 16  ;;  %s569_s21 = sadd.s32 7, %s1276_s19 }
  0x66   : > { %s570_s22 = sld [smem:[#allocation5 + %s569_s21]] }
  0x6c   : > { %s571_s26 = scalar_lea.vmem %s1407_s2, %s570_s22 }
  0x6d   : > { %v591_v7 = vld [vmem:[%s571_s26] sm:$0x1] }
  0x6e   : > { %592 = vst [vmem:[#allocation2 + $0x7] sm:$0x1] %v591_v7 }
  0x6f   : > { %617 = vsyncadd [#allocation3 + $0x7], 16  ;;  %s1317_s20 = smov 0  }
  0x70 LB: >> { %p624_p2 = scmp.lt.s32.totalorder %s1173_s20, 0  ;;  %s625_s27 = ssub.s32 0, %s1173_s20  ;;  %s1173_s20 = sphi %s1317_s20, %s623_s20  }
  0x71   : >> { %s1010_s10 = smin.u32 %s1173_s20, %s625_s27 }
  0x72   : >> { %s627_s28 = sand.u32 7, %s1010_s10  }
  0x73   : >> { %s628_s12 = ssub.s32 0, %s627_s28 }
  0x74   : >> { %s1428_s12 = smov (!%p624_p2, %s628_s12), %s627_s28 }
  0x75   : >> { %p1012_p3 = scmp.lt.s32.totalorder %s1428_s12, 0  ;;  %s634_s14 = sadd.s32 8, %s1428_s12 }
  0x77   : >> { %s1430_s14 = smov (!%p1012_p3, %s634_s14), %s1428_s12 }
  0x78   : >> { %s636_s17 = scalar_lea.sflag [#allocation3], %s1430_s14 }
  0x79   : >> { %1149 = dma.done.wait %s636_s17, 16 }
  0x7a   : >> { %1150 = vsyncadd %s636_s17, 4294967280  ;;  %s639_s13 = sadd.s32 8, %s1173_s20 }
  0x7b   : >> { %p1013_p4 = scmp.ge.s32.totalorder %s639_s13, 8 }
  0x7c   : >> { %s644_s21 = sadd.s32 (!%p1013_p4), %s1276_s19, %s639_s13  ;;  %p646_p5 = scmp.lt.s32.totalorder (!%p1013_p4), %s639_s13, 0 }
  0x7d   : >> { %643 = sbr.rel (%p1013_p4) target bundleno = 138 (0x8a), region = 291  ;;  %s645_s22 = sld [smem:[#allocation5 + %s644_s21]] (!%p1013_p4) }
  0x7e   : >> { %s647_s23 = ssub.s32 (!%p1013_p4), 0, %s639_s13  ;;  %s891_s17 = scalar_lea.vmem (!%p1013_p4), [#allocation2], %s1173_s20 }
  0x7f   : >> { %s1014_s24 = smin.u32 (!%p1013_p4), %s647_s23, %s639_s13 }
  0x80   : >> { %s649_s26 = sand.u32 (!%p1013_p4), 7, %s1014_s24  }
  0x81   : >> { %s650_s27 = ssub.s32 (!%p1013_p4), 0, %s649_s26 }
  0x83   : >> { %s658_s14 = scalar_lea.vmem (!%p1013_p4), %s1407_s2, %s645_s22 }
  0x84   : >> { %s1432_s27 = smov (!%p646_p5, %s650_s27), %s649_s26  ;;  %v678_v8 = vld [vmem:[%s658_s14] sm:$0x1] }
  0x85   : >> { %p1016_p6 = scmp.lt.s32.totalorder %s1432_s27, 0  ;;  %s656_s10 = sadd.s32 8, %s1432_s27  ;;  %1018 = vst [vmem:[%s891_s17 + $0x8] sm:$0x1] %v678_v8 }
  0x87   : >> { %s1434_s10 = smov (!%p1016_p6, %s656_s10), %s1432_s27 }
  0x88   : >> { %s660_s1 = scalar_lea.sflag [#allocation3], %s1434_s10 }
  0x89   : >> { %704 = vsyncadd %s660_s1, 16 }
  0x8a PF: >> { %s623_s20 = sadd.s32 1, %s1173_s20  }
  0x8b   : >> { %p620_p7 = scmp.ge.s32.totalorder %s623_s20, 8  }
  0x8c   : > { %v708_v9 = vld [vmem:[%s1283_s25] sm:$0xff] (%p620_p7)  ;;  %v1176_v10 = vmov (%p620_p7), 0   ;;  %vm727_vm2 = vcmask (%p620_p7), 261120   ;;  %s1024_s27 = sshll.u32 (%p620_p7), %s1242_s9, 7  ;;  %s1419_s10 = scalar_lea.vmem (%p620_p7), [#allocation6], %s1273_s18 }
  0x8d   : > { %622 = sbr.rel (!%p620_p7) target bundleno = 112 (0x70), region = 479  ;;  %1084 = vset.pattern.permute.xlu0 (%p620_p7), %v1176_v10  ;;  %vm711_vm0 = vcmp.eq.s32.totalorder (%p620_p7), %v708_v9, 1  ;;  %v705_v12 = vld [vmem:[#allocation2] sm:$0xff] (%p620_p7)  ;;  %s773_s28 = sshll.u32 (%p620_p7), %s1419_s10, 4  ;;  %s1360_s28 = int_to_ptr.vmem [resolvable:$true] %s773_s28 }
  0x8e   : > { %v712_v11 = vsel (%p620_p7), %vm711_vm0, 1, %v1176_v10  ;;  %v706_v13 = vld [vmem:[%s1408_s3] sm:$0xff] (%p620_p7)  ;;  %s1358_s17 = scalar_lea.hbm (%p620_p7), %s1412_s7, %s1024_s27  ;;  %s1420_s13 = smov (%p620_p7), %s1419_s10 }
  0x8f   : > { %714 = vperm.xlu0 (%p620_p7), %1084, %v712_v11   ;;  %v1020_v14 = vld [vmem:[%s1409_s4] ss:$0 sm:$0xff] (%p620_p7)  ;;  %v1019_v15 = vld [vmem:[%s1409_s4 + $0x1] ss:$0 sm:$0xff] (%p620_p7)  ;;  %v707_v16 = vadd.f32 (%p620_p7), %v706_v13, %v705_v12  ;;  %s1421_s21 = sand.u32 (%p620_p7), 1, %s1161_s30   ;;  %s1099_s9 = scalar_lea.vmem (%p620_p7), %s1360_s28, 128 }
  0x90   : > { %v1021_v30 = vld [vmem:[%s1410_s5] ss:$0 sm:$0xff] (%p620_p7)  ;;  %s760_s1 = scalar_lea.sflag (%p620_p7), [#allocation7], %s1421_s21  ;;  %p1100_p8 = scmp.ne.s32.totalorder (%p620_p7), %s1360_s28, %s1099_s9 }
  0x91   : > { %v1022_v32 = vld [vmem:[%s1411_s6] ss:$0 sm:$0xff] (%p620_p7)  ;;  %s1177_s22 = smov (%p620_p7), [#allocation6]  }
  0x92   : > { %p1101_p9 = pnand (%p620_p7), %p1100_p8, %p1259_p10  ;;  %s1103_s23 = sshll.u32 (%p620_p7), %s1177_s22, 4  ;;  %s1104_s23 = int_to_ptr.vmem [resolvable:$false] %s1103_s23 }
  0x93   : > { %s1105_s24 = scalar_lea.vmem (%p620_p7), %s1104_s23, 256  ;;  %p1106_p13 = scmp.lt.s32.totalorder (%p620_p7), %s1360_s28, %s1104_s23 }
  0x94   : > { %p1102_p12 = pneg %p1101_p9  ;;  %p1107_p0 = scmp.lt.s32.totalorder %s1105_s24, %s1099_s9 }
  0x96   : > { %p1108_p1 = por %p1107_p0, %p1106_p13 }
  0x98   : > { %p1109_p2 = pnand %p1108_p1, %p1102_p12 }
 0x10e   : > { %v715_v17 = vpop.permute.xlu0 %714 }
 0x10f   : > { %vm716_vm1 = vcmp.eq.s32.totalorder %v715_v17, 1 }
 0x110   : > { %v725_v18 = vsel %vm716_vm1, %v1019_v15, %v1020_v14 }
 0x111   : > { %v726_v19 = vadd.f32 %v725_v18, %v707_v16 }
 0x113   : > { %v728_v20 = vsel %vm727_vm2, %v726_v19, 0.0 }
 0x114   : > { %729 = vadd.xlane.f32.xlu0 %v728_v20 }
 0x1a1   : > { %v730_v21 = vpop.xlane.xlu0 %729 }
 0x1a2   : > { %v732_v22 = vmul.f32 0.03125, %v730_v21 }
 0x1a4   : > { %v733_v23 = vsub.f32 %v726_v19, %v732_v22 }
 0x1a6   : > { %v734_v24 = vmul.f32 %v733_v23, %v733_v23 }
 0x1a8   : > { %v735_v25 = vsel %vm727_vm2, %v734_v24, 0.0 }
 0x1a9   : > { %736 = vadd.xlane.f32.xlu1 %v735_v25 }
 0x236   : > { %v737_v26 = vpop.xlane.xlu1 %736 }
 0x237   : > { %v738_v27 = vmul.f32 0.03125, %v737_v26 }
 0x239   : > { %v739_v28 = vadd.f32 1e-12, %v738_v27 }
 0x23b   : > { %1085 = vrsqrt.f32 %v739_v28 }
 0x245   : > { %v1086_v29 = vpop.eup %1085 }
 0x246   : > { %v741_v31 = vmul.f32 %v1086_v29, %v733_v23 }
 0x248   : > { %v749_v33 = vmul.f32 %v1021_v30, %v741_v31 }
 0x24a   : > { %v757_v34 = vadd.f32 %v1022_v32, %v749_v33 }
 0x24c   : > { %758 = vst.msk [vmem:[%s1420_s13] sm:$0xff] %vm727_vm2, %v757_v34 }
 0x24d   : > { %1112 = shalt.err (!%p1109_p2)
}
 0x24e   : > { %s1113_s18 = scalar_lea.hbm %s1358_s17, 128  ;;  %s1117_s20 = scalar_lea.hbm %s1412_s7, 256 }
 0x24f   : > { %p1114_p3 = scmp.ne.s32.totalorder %s1358_s17, %s1113_s18  ;;  %p1118_p6 = scmp.lt.u32.totalorder %s1358_s17, %s1412_s7 }
 0x250   : > { %p1119_p7 = scmp.lt.u32.totalorder %s1117_s20, %s1113_s18  ;;  %p1121_p9 = scmp.lt.u32.totalorder %s1113_s18, %s1358_s17 }
 0x251   : > { %p1115_p4 = pnand %p1114_p3, %p1259_p10 }
 0x252   : > { %p1120_p8 = por %p1119_p7, %p1118_p6 }
 0x253   : > { %p1116_p5 = pneg %p1115_p4 }
 0x254   : > { %p1122_p12 = por %p1121_p9, %p1120_p8 }
 0x256   : > { %p1123_p13 = pnand %p1122_p12, %p1116_p5 }
 0x258   : > { %1126 = shalt.err (!%p1123_p13)
}
 0x259   : > { %1035 = dma.vmem_to_hbm [thread:$0]  (%p1259_p10), %s1360_s28, 128, %s1358_s17, %s760_s1  }
 0x25a PF: > { %p1041_p0 = scmp.ge.s32.totalorder %s1169_s8, 2  ;;  %s785_s10 = sand.u32 1, %s1157_s29  }
 0x25b   : > { %s786_s12 = scalar_lea.sflag [#allocation7], %s785_s10 }
 0x25c   : > { %p1038_p1 = pnand %p1041_p0, %p1263_p11 }
 0x25e   : > { %1152 = dma.done.wait (!%p1038_p1), %s786_s12, 128  }
 0x25f   : > { %1154 = vsyncadd (!%p1038_p1), %s786_s12, 4294967168  ;;  %s1422_s14 = sld [smem:[#allocation20_spill]]  ;;  %p23_p2 = scmp.ge.s32.totalorder %s1246_s11, 4  }
 0x260   : > { %s1423_s29 = smov %s1161_s30  ;;  %s1424_s30 = smov %s1165_s0 }
 0x261   : > { %s1426_s8 = smov %s1246_s11  ;;  %25 = sbr.rel (!%p23_p2) target bundleno = 18 (0x12), region = 490 }
 0x265   : > { %s1425_s0 = smov %s1422_s14 }
 0x268   :  { %791 = vsyncpa [#allocation7], 1 }
 0x269   :  { %793 = vsyncpa [#allocation7 + $0x1], 1 }
 0x26a   :  { %794 = vsyncmov [#allocation3] }
 0x26d   :  { %s795_s8 = vpop.sfrf %794 }
 0x26e   :  { %p1027_p10 = scmp.ne.s32.totalorder %s795_s8, 0 }
 0x270   :  { %799 = shalt.err (%p1027_p10)  }
 0x271   :  { %801 = vsyncmov [#allocation3 + $0x1] }
 0x274   :  { %s802_s15 = vpop.sfrf %801 }
 0x275   :  { %p1028_p11 = scmp.ne.s32.totalorder %s802_s15, 0 }
 0x277   :  { %806 = shalt.err (%p1028_p11)  }
 0x278   :  { %808 = vsyncmov [#allocation3 + $0x2] }
 0x27b   :  { %s809_s16 = vpop.sfrf %808 }
 0x27c   :  { %p1029_p3 = scmp.ne.s32.totalorder %s809_s16, 0 }
 0x27e   :  { %813 = shalt.err (%p1029_p3)  }
 0x27f   :  { %815 = vsyncmov [#allocation3 + $0x3] }
 0x282   :  { %s816_s28 = vpop.sfrf %815 }
 0x283   :  { %p1030_p4 = scmp.ne.s32.totalorder %s816_s28, 0 }
 0x285   :  { %820 = shalt.err (%p1030_p4)  }
 0x286   :  { %822 = vsyncmov [#allocation3 + $0x4] }
 0x289   :  { %s823_s11 = vpop.sfrf %822 }
 0x28a   :  { %p1031_p5 = scmp.ne.s32.totalorder %s823_s11, 0 }
 0x28c   :  { %827 = shalt.err (%p1031_p5)  }
 0x28d   :  { %829 = vsyncmov [#allocation3 + $0x5] }
 0x290   :  { %s830_s2 = vpop.sfrf %829 }
 0x291   :  { %p1032_p6 = scmp.ne.s32.totalorder %s830_s2, 0 }
 0x293   :  { %834 = shalt.err (%p1032_p6)  }
 0x294   :  { %836 = vsyncmov [#allocation3 + $0x6] }
 0x297   :  { %s837_s3 = vpop.sfrf %836 }
 0x298   :  { %p1033_p7 = scmp.ne.s32.totalorder %s837_s3, 0 }
 0x29a   :  { %841 = shalt.err (%p1033_p7)  }
 0x29b   :  { %843 = vsyncmov [#allocation3 + $0x7] }
 0x29e   :  { %s844_s4 = vpop.sfrf %843 }
 0x29f   :  { %p1034_p8 = scmp.ne.s32.totalorder %s844_s4, 0 }
 0x2a1   :  { %848 = shalt.err (%p1034_p8)  }

</bundles_post_ra>
